<compile_context>
chip_gen: v7x
topology: tpu7x:2x2x1
jax: 0.10.0
libtpu: 0.0.40
codegen_flags: <defaults>
</compile_context>

<pallas_src>
import functools

import jax
import jax.numpy as jnp
from jax.experimental import pallas as pl
from jax.experimental.pallas import tpu as pltpu


# ---- "config" values from the original module (small & self-consistent) ----
PRIM_NUM = 20
IN_FEATURES = 128 + PRIM_NUM * 10     # 328
SHAPE_FEATHERS = 3 * PRIM_NUM         # 60
SHAPE_LR_DECAY = 0.01
SHAPE_BOUND = 0.5


def _round_up(x, m):
    return ((x + m - 1) // m) * m


def _shape_pred_kernel(x_ref, w_ref, b_ref, o_ref, *, shape_bound):
    # x_ref: (TILE_B, K)      -- K is the true in_features (full-dim block)
    # w_ref: (K, Npad)        -- lrDecay already folded in; bf16 (or f32)
    # b_ref: (1, Npad)        -- lrDecay already folded in; f32
    # o_ref: (TILE_B, Npad)   -- Npad multiple of 128 -> lane-dense stores
    xv = x_ref[...].astype(w_ref.dtype)                    # VMEM cast, no HBM cost
    y = jnp.dot(xv, w_ref[...], preferred_element_type=jnp.float32)
    y = y + b_ref[...].astype(jnp.float32)                 # bias (already *lrDecay)
    o_ref[...] = (jnp.tanh(y) * shape_bound).astype(o_ref.dtype)


def shape_pred(x, weight, bias, *, lr_decay=SHAPE_LR_DECAY,
               shape_bound=SHAPE_BOUND, max_tile_b=2048,
               matmul_dtype=jnp.bfloat16, core_parallel=False):
    """Forward pass of ShapePred.

    x:      (B, ...) with prod(...) == in_features (flattened like torch .view)
    weight: (out_features, in_features)  -- torch nn.Linear layout
    bias:   (out_features,)
    returns squeeze of (B, out_features), float32
    """
    B = x.shape[0]
    x2 = x.reshape(B, -1)                 # metadata-only for contiguous x
    K = x2.shape[1]
    F = weight.shape[0]

    # Only the tiny weight/bias get padded, to a lane multiple of 128 (exact
    # math: zero columns contribute nothing; wrapper slices them off).
    Npad = _round_up(F, 128)

    # Fold lrDecay into weight & bias once (tiny; constant-folds under jit —
    # for eager repeated calls precompute these two arrays outside the loop).
    wp = jnp.pad((weight.T.astype(jnp.float32) * lr_decay).astype(matmul_dtype),
                 ((0, 0), (0, Npad - F)))
    bp = jnp.pad((bias.astype(jnp.float32) * lr_decay).reshape(1, F),
                 ((0, 0), (0, Npad - F)))

    # Batch tiling: full-extent block when B fits in one tile (exempt from the
    # 8-sublane rule); otherwise a multiple-of-8 tile with a masked partial
    # last block via cdiv — no batch padding, no extra DMA/MXU work.
    max_tile_b = max(8, (int(max_tile_b) // 8) * 8)
    if B <= max_tile_b:
        tile_b = B
    else:
        tile_b = max_tile_b
    grid = (pl.cdiv(B, tile_b),)

    # On v7x pass core_parallel=True to shard batch tiles across both
    # TensorCores; plain PARALLEL is the safe default on 1-TC chips.
    sem = (pltpu.CORE_PARALLEL if core_parallel else pltpu.PARALLEL,)

    out = pl.pallas_call(
        functools.partial(_shape_pred_kernel, shape_bound=float(shape_bound)),
        out_shape=jax.ShapeDtypeStruct((B, Npad), jnp.float32),
        grid=grid,
        in_specs=[
            pl.BlockSpec((tile_b, K), lambda i: (i, 0)),    # x tile (pipelined, unpadded K)
            pl.BlockSpec((K, Npad), lambda i: (0, 0)),      # weight (VMEM-resident)
            pl.BlockSpec((1, Npad), lambda i: (0, 0)),      # bias   (VMEM-resident)
        ],
        out_specs=pl.BlockSpec((tile_b, Npad), lambda i: (i, 0)),
        compiler_params=pltpu.CompilerParams(dimension_semantics=sem),
    )(x2, wp, bp)

    return jnp.squeeze(out[:, :F])        # strip feature padding; torch .squeeze()


if __name__ == "__main__":
    key = jax.random.PRNGKey(0)
    k_x, k_w = jax.random.split(key)

    # Parameter init mirroring the PyTorch __init__: weight ~ N(0, 0.02), bias = 0.
    weight = 0.02 * jax.random.normal(
        k_w, (SHAPE_FEATHERS, IN_FEATURES), dtype=jnp.float32)
    bias = jnp.zeros((SHAPE_FEATHERS,), dtype=jnp.float32)

    # B deliberately not a multiple of 8 to exercise the unpadded-batch path.
    B = 13
    x = jax.random.normal(k_x, (B, IN_FEATURES), dtype=jnp.float32)

    # Default path: single full-extent batch block.
    out = jax.block_until_ready(shape_pred(x, weight, bias))
    # Multi-tile path with a masked partial last block (grid = cdiv(13, 8) = 2).
    out_tiled = jax.block_until_ready(shape_pred(x, weight, bias, max_tile_b=8))

    # References.
    x2 = x.reshape(B, -1)
    # bf16-matched reference (operands quantized exactly like the kernel).
    wq = (weight * SHAPE_LR_DECAY).astype(jnp.bfloat16).astype(jnp.float32)
    xq = x2.astype(jnp.bfloat16).astype(jnp.float32)
    ref = jnp.squeeze(jnp.tanh(xq @ wq.T + bias * SHAPE_LR_DECAY) * SHAPE_BOUND)
    # Exact-f32 reference (sanity bound on the bf16 quantization error).
    ref_f32 = jnp.squeeze(
        jnp.tanh((x2 @ weight.T + bias) * SHAPE_LR_DECAY) * SHAPE_BOUND)

    assert out.shape == ref.shape, (out.shape, ref.shape)
    assert out_tiled.shape == ref.shape, (out_tiled.shape, ref.shape)
    assert jnp.allclose(out, ref, atol=1e-5), "mismatch vs bf16-matched reference"
    assert jnp.allclose(out_tiled, ref, atol=1e-5), "mismatch (tiled) vs reference"
    assert jnp.allclose(out, ref_f32, atol=1e-3), "bf16 quantization error too large"

    print("KERNEL_OK")
</pallas_src>

<mosaic_0001>
module attributes {stable_mosaic.version = 11 : i64} {
  func.func @_shape_pred_kernel(%arg0: i32, %arg1: memref<13x328xf32, #tpu.memory_space<vmem>>, %arg2: memref<328x128xbf16, #tpu.memory_space<vmem>>, %arg3: memref<1x128xf32, #tpu.memory_space<vmem>>, %arg4: memref<13x128xf32, #tpu.memory_space<vmem>>) attributes {dimension_semantics = [#tpu.dimension_semantics<parallel>], iteration_bounds = array<i64: 1>, scalar_prefetch = 0 : i64, scratch_operands = 0 : i64, tpu.core_type = #tpu.core_type<tc>, window_params = [{transform_indices = @transform_0, window_bounds = array<i64: 13, 328>}, {pipeline_mode = #tpu.pipeline_mode<synchronous>, transform_indices = @transform_1, window_bounds = array<i64: 328, 128>}, {pipeline_mode = #tpu.pipeline_mode<synchronous>, transform_indices = @transform_2, window_bounds = array<i64: 1, 128>}, {transform_indices = @transform_3, window_bounds = array<i64: 13, 128>}]} {
    %c0 = arith.constant 0 : index
    %c0_0 = arith.constant 0 : index
    %0 = vector.load %arg1[%c0, %c0_0] : memref<13x328xf32, #tpu.memory_space<vmem>>, vector<13x328xf32>
    %1 = arith.truncf %0 : vector<13x328xf32> to vector<13x328xbf16>
    %c0_1 = arith.constant 0 : index
    %c0_2 = arith.constant 0 : index
    %2 = vector.load %arg2[%c0_1, %c0_2] : memref<328x128xbf16, #tpu.memory_space<vmem>>, vector<328x128xbf16>
    %cst = arith.constant dense<0.000000e+00> : vector<13x128xf32>
    %3 = tpu.matmul %1, %2, %cst {dimension_numbers = #tpu.dot_dimension_numbers<[1], [0], [0], [1], [0, 0, 1, 1], [], []>} : vector<13x328xbf16>, vector<328x128xbf16>, vector<13x128xf32> -> vector<13x128xf32>
    %c0_3 = arith.constant 0 : index
    %c0_4 = arith.constant 0 : index
    %4 = vector.load %arg3[%c0_3, %c0_4] : memref<1x128xf32, #tpu.memory_space<vmem>>, vector<1x128xf32>
    %5 = vector.broadcast %4 : vector<1x128xf32> to vector<13x128xf32>
    %6 = arith.addf %3, %5 : vector<13x128xf32>
    %7 = math.tanh %6 : vector<13x128xf32>
    %cst_5 = arith.constant 5.000000e-01 : f32
    %8 = vector.broadcast %cst_5 : f32 to vector<13x128xf32>
    %9 = arith.mulf %7, %8 : vector<13x128xf32>
    %c0_6 = arith.constant 0 : index
    %c0_7 = arith.constant 0 : index
    %10 = vector.load %arg4[%c0_6, %c0_7] : memref<13x128xf32, #tpu.memory_space<vmem>>, vector<13x128xf32>
    tpu.vector_store %arg4[%c0_6, %c0_7], %9 {strides = array<i32>} : memref<13x128xf32, #tpu.memory_space<vmem>>, vector<13x128xf32>,
    return
  }
  func.func @transform_0(%arg0: i32) -> (i32, i32) {
    %c0_i32 = arith.constant 0 : i32
    %c0_i32_0 = arith.constant 0 : i32
    return %arg0, %c0_i32 : i32, i32
  }
  func.func @transform_1(%arg0: i32) -> (i32, i32) {
    %c0_i32 = arith.constant 0 : i32
    %c0_i32_0 = arith.constant 0 : i32
    %c0_i32_1 = arith.constant 0 : i32
    return %c0_i32, %c0_i32_0 : i32, i32
  }
  func.func @transform_2(%arg0: i32) -> (i32, i32) {
    %c0_i32 = arith.constant 0 : i32
    %c0_i32_0 = arith.constant 0 : i32
    %c0_i32_1 = arith.constant 0 : i32
    return %c0_i32, %c0_i32_0 : i32, i32
  }
  func.func @transform_3(%arg0: i32) -> (i32, i32) {
    %c0_i32 = arith.constant 0 : i32
    %c0_i32_0 = arith.constant 0 : i32
    return %arg0, %c0_i32 : i32, i32
  }
}

</mosaic_0001>

<bundles_post_ra>
// kernel: tpu_custom_call.1
= control target key start
LH: loop header
LB: loop body
LE: loop exit
PB: predicated region body
PF: predicated region fallthrough
CT: control target
= control target key end

     0   :  { %8 = vsyncpa [#allocation3], 0  ;;  %s581_s0 = inlined_call_operand.hbm [shape: f32[13,328], index: 0, kind: input, shape index: {}]   ;;  %s582_s1 = inlined_call_operand.hbm [shape: bf16[328,128], index: 1, kind: input, shape index: {}]   ;;  %s583_s2 = inlined_call_operand.vmem [shape: f32[1,128], index: 2, kind: input, shape index: {}]   ;;  %s584_s3 = inlined_call_operand.hbm [shape: f32[13,128], index: 3, kind: output, shape index: {}]  }
   0x1   :  { %9 = vsyncpa [#allocation6], 0 }
   0x2   :  { %10 = vsyncpa [#allocation4], 0  ;;  %s511_s12 = smov [#allocation2]   ;;  %s439_s16 = scalar_lea.hbm %s581_s0, 768 }
   0x3   :  { %s16_s13 = sshll.u32 %s511_s12, 4  ;;  %p440_p0 = scmp.ne.s32.totalorder %s581_s0, %s439_s16  ;;  %s17_s13 = int_to_ptr.vmem [resolvable:$true] %s16_s13 }
   0x4   :  { %p443_p1 = scmp.lt.u32.totalorder %s439_s16, %s581_s0 }
   0x6   :  { %p445_p2 = pnand %p443_p1, %p440_p0 }
   0x8   :  { %448 = shalt.err (!%p445_p2)
}
   0x9   :  { %s449_s21 = scalar_lea.vmem %s17_s13, 768  ;;  %p454_p4 = scmp.lt.s32.totalorder %s17_s13, %s17_s13 }
   0xa   :  { %p450_p3 = scmp.ne.s32.totalorder %s17_s13, %s449_s21  ;;  %p455_p5 = scmp.lt.s32.totalorder %s449_s21, %s449_s21 }
   0xc   :  { %p456_p6 = por %p455_p5, %p454_p4 }
   0xe   :  { %p457_p7 = pnand %p456_p6, %p450_p3 }
  0x10   :  { %460 = shalt.err (!%p457_p7)
}
  0x11   :  { %s512_s22 = smov 384   ;;  %s513_s23 = smov 24  }
  0x12   :  { %22 = dma.hbm_to_vmem [thread:$0]  %s581_s0, 768, %s17_s13, [#allocation3], %s512_s22, %s512_s22, %s513_s23  }
  0x13   :  { %s514_s26 = smov [#allocation5]   ;;  %s461_s30 = scalar_lea.hbm %s582_s1, 2624 }
  0x14   :  { %s28_s27 = sshll.u32 %s514_s26, 4  ;;  %p462_p8 = scmp.ne.s32.totalorder %s582_s1, %s461_s30  ;;  %s29_s27 = int_to_ptr.vmem [resolvable:$true] %s28_s27 }
  0x15   :  { %p465_p9 = scmp.lt.u32.totalorder %s461_s30, %s582_s1 }
  0x17   :  { %p467_p10 = pnand %p465_p9, %p462_p8 }
  0x19   :  { %470 = shalt.err (!%p467_p10)
}
  0x1a   :  { %s471_s8 = scalar_lea.vmem %s29_s27, 2624  ;;  %p476_p12 = scmp.lt.s32.totalorder %s29_s27, %s29_s27 }
  0x1b   :  { %p472_p11 = scmp.ne.s32.totalorder %s29_s27, %s471_s8  ;;  %p477_p13 = scmp.lt.s32.totalorder %s471_s8, %s471_s8 }
  0x1d   :  { %p478_p0 = por %p477_p13, %p476_p12 }
  0x1f   :  { %p479_p1 = pnand %p478_p0, %p472_p11 }
  0x21   :  { %482 = shalt.err (!%p479_p1)
}
  0x22   :  { %s515_s0 = smov 64   ;;  %s516_s9 = smov 4  }
  0x23   :  { %34 = dma.hbm_to_vmem [thread:$0]  %s582_s1, 2624, %s29_s27, [#allocation6], %s515_s0, %s515_s0, %s516_s9  }
  0x24   :  { %505 = dma.done.wait [#allocation3], 768  }
  0x25   :  { %506 = vsyncadd [#allocation3], 4294966528 }
  0x26   :  { %507 = dma.done.wait [#allocation6], 2624  }
  0x27   :  { %508 = vsyncadd [#allocation6], 4294964672  ;;  %v517_v0 = vmov 0.0   ;;  %vm518_vm0 = vmmov 0   ;;  %v414_v1 = vld [vmem:[#allocation5 + $0x40] sm:$0xff]   ;;  %v416_v3 = vld [vmem:[#allocation5 + $0x48] sm:$0xff]  }
  0x28   :  { %389 = vmatprep.subr.bf16.mxu1 %v517_v0  ;;  %399 = vmatprep.mubr.msk.bf16.mxu1 %vm518_vm0, %v517_v0  ;;  %v415_v2 = vld [vmem:[#allocation5] sm:$0xff]   ;;  %v417_v4 = vld [vmem:[#allocation5 + $0x8] sm:$0xff]   ;;  %v418_v5 = vld [vmem:[#allocation5 + $0x50] sm:$0xff]   ;;  %vm228_vm1 = vcmask 1043456   ;;  %vm224_vm2 = vcmask 588800   ;;  %s519_s13 = smov [#allocation7]  }
  0x29   :  { %361 = vmatprep.subr.bf16.mxu0 %v414_v1  ;;  %v419_v6 = vld [vmem:[#allocation5 + $0x10] sm:$0xff]   ;;  %v420_v7 = vld [vmem:[#allocation5 + $0x58] sm:$0xff]   ;;  %v422_v8 = vld [vmem:[#allocation5 + $0x80] sm:$0xff]   ;;  %s325_s14 = sshll.u32 %s519_s13, 4  ;;  %s326_s14 = int_to_ptr.vmem [resolvable:$true] %s325_s14 }
  0x2a   :  { %362 = vmatpush3.bf16.msra.mxu0 %v415_v2  ;;  %v421_v9 = vld [vmem:[#allocation5 + $0x18] sm:$0xff]   ;;  %390 = vmatpush3.bf16.msra.mxu1 %v422_v8  ;;  %v425_v10 = vld [vmem:[#allocation5 + $0x88] sm:$0xff]   ;;  %v423_v11 = vld [vmem:[#allocation5 + $0x60] sm:$0xff]   ;;  %p488_p3 = scmp.lt.s32.totalorder %s326_s14, %s326_s14 }
  0x2b   :  { %363 = vmatprep.subr.bf16.mxu0 %v416_v3  ;;  %391 = vmatprep.subr.bf16.mxu1 %v517_v0  ;;  %v428_v12 = vld [vmem:[#allocation5 + $0x90] sm:$0xff]   ;;  %v424_v13 = vld [vmem:[#allocation5 + $0x20] sm:$0xff]   ;;  %v426_v14 = vld [vmem:[#allocation5 + $0x68] sm:$0xff]  }
  0x2c   :  { %v427_v15 = vld [vmem:[#allocation5 + $0x28] sm:$0xff]   ;;  %v431_v16 = vld [vmem:[#allocation5 + $0x98] sm:$0xff]   ;;  %v429_v17 = vld [vmem:[#allocation5 + $0x70] sm:$0xff]  }
  0x2d   :  { %v45_v18 = vld [vmem:[#allocation2 + $0x8] sm:$0xff]  ;;  %v48_v19 = vld [vmem:[#allocation2 + $0x20] sm:$0x1f]  ;;  %v434_v21 = vld [vmem:[#allocation5 + $0xa0] ss:$0 sps:$4 sm:$0xff]  }
  0x2e   :  { %364 = vmatpush3.bf16.msra.mxu0 %v417_v4  ;;  %392 = vmatpush3.bf16.msra.mxu1 %v425_v10  ;;  %v51_v20 = vpack.c.bf16 %v48_v19, %v45_v18  ;;  %v46_v22 = vld [vmem:[#allocation2 + $0x10] sm:$0xff]  ;;  %v49_v23 = vld [vmem:[#allocation2 + $0x28] sm:$0x1f]  ;;  %v430_v24 = vld [vmem:[#allocation5 + $0x30] sm:$0xff]   ;;  %v230_v25 = vsel %vm228_vm1, %v434_v21, 0 }
  0x2f   :  { %365 = vmatprep.subr.bf16.mxu0 %v418_v5  ;;  %393 = vmatprep.subr.bf16.mxu1 %v517_v0  ;;  %v432_v26 = vld [vmem:[#allocation5 + $0x78] sm:$0xff]   ;;  %v52_v27 = vpack.c.bf16 %v49_v23, %v46_v22  ;;  %v44_v29 = vld [vmem:[#allocation2] sm:$0xff]  ;;  %v47_v30 = vld [vmem:[#allocation2 + $0x18] sm:$0x1f] }
  0x30   :  { %264 = vmatprep.mubr.bf16.mxu0 %v51_v20  ;;  %v433_v28 = vld [vmem:[#allocation5 + $0x38] sm:$0xff]   ;;  %v50_v31 = vpack.c.bf16 %v47_v30, %v44_v29  ;;  %v338_v38 = vld [vmem:[%s583_s2] ss:$0 sm:$0xff]  ;;  %s483_s2 = scalar_lea.vmem %s326_s14, 256 }
  0x31   :  { %p484_p2 = scmp.ne.s32.totalorder %s326_s14, %s483_s2  ;;  %p489_p4 = scmp.lt.s32.totalorder %s483_s2, %s483_s2 }
  0x32   :  { %366 = vmatpush3.bf16.msra.mxu0 %v419_v6  ;;  %394 = vmatpush3.bf16.msra.mxu1 %v428_v12 }
  0x33   :  { %367 = vmatprep.subr.bf16.mxu0 %v420_v7  ;;  %395 = vmatprep.subr.bf16.mxu1 %v517_v0  ;;  %p490_p5 = por %p489_p4, %p488_p3 }
  0x35   :  { %p491_p6 = pnand %p490_p5, %p484_p2 }
  0x36   :  { %368 = vmatpush3.bf16.msra.mxu0 %v421_v9  ;;  %396 = vmatpush3.bf16.msra.mxu1 %v431_v16 }
  0x37   :  { %369 = vmatprep.subr.bf16.mxu0 %v423_v11  ;;  %397 = vmatprep.subr.bf16.mxu1 %v517_v0 }
  0x3a   :  { %370 = vmatpush3.bf16.msra.mxu0 %v424_v13  ;;  %398 = vmatpush3.bf16.msra.mxu1 %v230_v25 }
  0x3b   :  { %371 = vmatprep.subr.bf16.mxu0 %v426_v14 }
  0x3d   :  { %400 = vmatmul.mubr.msk.bf16.vlgmr.msra.gmra.mrb[0].mxu1 %vm224_vm2, %v52_v27 }
  0x3e   :  { %372 = vmatpush3.bf16.msra.mxu0 %v427_v15 }
  0x3f   :  { %373 = vmatprep.subr.bf16.mxu0 %v429_v17 }
  0x42   :  { %374 = vmatpush3.bf16.msra.mxu0 %v430_v24 }
  0x43   :  { %375 = vmatprep.subr.bf16.mxu0 %v432_v26 }
  0x46   :  { %376 = vmatpush3.bf16.msra.mxu0 %v433_v28 }
  0x49   :  { %265 = vmatmul.mubr.bf16.vlgmr.msra.gmra.mrb[0].mxu0 %v50_v31 }
 0x110   :  { %v307_v32 = vpop.f32.mrb[0].mxu1 }
 0x111   :  { %v401_v33 = vpop.f32.mrb[1].mxu1 }
 0x112   :  { %v310_v34 = vpop.f32.mrb[2].mxu1 }
 0x113   :  { %v402_v35 = vpop.f32.mrb[3].mxu1 }
 0x11c   :  { %v377_v36 = vpop.f32.mrb[0].mxu0 }
 0x11d   :  { %v378_v37 = vpop.f32.mrb[1].mxu0 }
 0x11e   :  { %v379_v39 = vadd.f32 %v378_v37, %v377_v36  ;;  %v380_v40 = vpop.f32.mrb[2].mxu0 }
 0x11f   :  { %v381_v41 = vpop.f32.mrb[3].mxu0 }
 0x120   :  { %v267_v42 = vadd.f32 %v379_v39, %v338_v38  ;;  %v382_v43 = vadd.f32 %v381_v41, %v380_v40 }
 0x122   :  { %v308_v44 = vadd.f32 %v307_v32, %v267_v42  ;;  %v270_v45 = vadd.f32 %v382_v43, %v338_v38 }
 0x124   :  { %435 = vtanh.f32 %v308_v44  ;;  %v311_v46 = vadd.f32 %v310_v34, %v270_v45 }
 0x126   :  { %437 = vtanh.f32 %v311_v46 }
 0x12e   :  { %v436_v47 = vpop.eup %435 }
 0x12f   :  { %v316_v48 = vmul.f32 0.5, %v436_v47 }
 0x130   :  { %v438_v49 = vpop.eup %437 }
 0x131   :  { %318 = vst [vmem:[#allocation7] sm:$0xff] %v316_v48  ;;  %v317_v50 = vmul.f32 0.5, %v438_v49 }
 0x133   :  { %319 = vst [vmem:[#allocation7 + $0x8] sm:$0x1f] %v317_v50 }
 0x134   :  { %494 = shalt.err (!%p491_p6)
}
 0x135   :  { %s495_s17 = scalar_lea.hbm %s584_s3, 256 }
 0x136   :  { %p496_p7 = scmp.ne.s32.totalorder %s584_s3, %s495_s17  ;;  %p499_p8 = scmp.lt.u32.totalorder %s495_s17, %s584_s3 }
 0x138   :  { %p501_p9 = pnand %p499_p8, %p496_p7 }
 0x13a   :  { %504 = shalt.err (!%p501_p9)
}
 0x13b   :  { %s520_s22 = smov 128   ;;  %s521_s23 = smov 8  }
 0x13c   :  { %331 = dma.vmem_to_hbm [thread:$0]  %s326_s14, 256, %s584_s3, [#allocation4], %s520_s22, %s520_s22, %s521_s23  }
 0x13d   :  { %509 = dma.done.wait [#allocation4], 256  }
 0x13e   :  { %510 = vsyncadd [#allocation4], 4294967040 }
 0x13f   :  { %335 = vsyncpa [#allocation3], 1 }
 0x140   :  { %336 = vsyncpa [#allocation6], 1 }
 0x141   :  { %337 = vsyncpa [#allocation4], 1 }

</bundles_post_ra>
